<compile_context>
chip_gen: v5e
topology: v5e:2x2
jax: 0.10.0
libtpu: 0.0.40
codegen_flags: <defaults>
</compile_context>

<pallas_src>
import functools

import jax
import jax.numpy as jnp
from jax.experimental import pallas as pl
from jax.experimental.pallas import tpu as pltpu


def _tps_eval_kernel(gxy_ref, src_ref, wv_ref, out_ref, *, n, batch_axis):
    """One (row-tile, batch) grid step of the TPS evaluation.

    gxy_ref : VMEM (2, TR, NC) f32      lane-major grid coords, [0]=x, [1]=y
    src_ref : SMEM (B*2*n,)    f32      control points flattened (x0,y0,x1,y1,...)
    wv_ref  : SMEM (B*2*(n+3),) f32     TPS weights flattened row-major from (n+3, 2)
    out_ref : VMEM (1, 2, TR, NC) f32
    """
    b = pl.program_id(batch_axis)
    sb = b * (2 * n)
    wb = b * (2 * (n + 3))

    gx = gxy_ref[0]            # (TR, NC)
    gy = gxy_ref[1]            # (TR, NC)

    # Affine part: a0 + ax*gx + ay*gy  (wv rows n, n+1, n+2; col 0 -> x, col 1 -> y)
    out_x = (wv_ref[wb + 2 * n + 0]
             + wv_ref[wb + 2 * (n + 1) + 0] * gx
             + wv_ref[wb + 2 * (n + 2) + 0] * gy)
    out_y = (wv_ref[wb + 2 * n + 1]
             + wv_ref[wb + 2 * (n + 1) + 1] * gx
             + wv_ref[wb + 2 * (n + 2) + 1] * gy)

    # Radial part: fully unrolled VPU FMAs over the n control points (VALU-bound).
    for j in range(n):
        sx = src_ref[sb + 2 * j + 0]
        sy = src_ref[sb + 2 * j + 1]
        dx = gx - sx
        dy = gy - sy
        k = jnp.sqrt(dx * dx + dy * dy)          # plain L2 norm, matches the module
        out_x = out_x + wv_ref[wb + 2 * j + 0] * k
        out_y = out_y + wv_ref[wb + 2 * j + 1] * k

    out_ref[0, 0] = out_x
    out_ref[0, 1] = out_y


def _tiling(G):
    """Pick (lane width NC, rows per tile TR, padded rows Rpad) for G grid points.

    Priorities: exact fit (rpad*nc == G, no post-kernel copy), dense sublanes
    (tr multiple of 8 or full-extent), ~256K points/step (~8 MiB double-buffered:
    fits v5e's 16 MiB scoped VMEM and v7x's 32 MiB scoped / 64 MiB physical).
    """
    target_pts = 256 * 1024

    # Lane width: largest of {512, 256, 128} dividing G with at least 8 rows
    # (exact fit + dense sublanes); otherwise 128 with row padding.
    nc = next((c for c in (512, 256, 128) if G % c == 0 and G // c >= 8), 128)
    r = -(-G // nc)                             # rows needed (exact when nc | G)

    target_rows = max(8, (target_pts // nc) // 8 * 8)

    if r <= target_rows:
        if r < 8:
            tr = rpad = 8                       # pad tiny grids to dense sublanes
        else:
            tr = rpad = r                       # single full-extent row tile
        return nc, tr, rpad

    # Multi-tile: largest tr (multiple of 8, <= target_rows) that divides r, so
    # rpad == r and the post-kernel slice is a no-op.
    tr = next((c for c in range(target_rows, 7, -8) if r % c == 0), target_rows)
    rpad = -(-r // tr) * tr
    return nc, tr, rpad


def tps_warp(src, dst, s):
    """Reproduces TpsWarp(s).forward(src, dst).

    src, dst: (B, n, 2) float32 control points.
    Returns (B, 2, s, s) float32 warped grid (channel 0 = x, channel 1 = y).
    """
    src = src.astype(jnp.float32)
    dst = dst.astype(jnp.float32)
    B, n, _ = src.shape

    # ---- TPS system + batched solve (glue; tiny (n+3)x(n+3) dense solve) ----
    # TODO(synk): torch.solve -> jnp.linalg.solve in plain JAX (no Pallas batched LU);
    # for small B/n/s this tiny solve dominates wall clock — cache wv if this path is hot.
    delta = src[:, :, None, :] - src[:, None, :, :]
    K = jnp.sqrt(jnp.sum(delta * delta, axis=-1))
    P = jnp.concatenate([jnp.ones((B, n, 1), jnp.float32), src], axis=2)
    L_top = jnp.concatenate([K, P], axis=2)
    L_bot = jnp.concatenate(
        [jnp.transpose(P, (0, 2, 1)), jnp.zeros((B, 3, 3), jnp.float32)], axis=2)
    L = jnp.concatenate([L_top, L_bot], axis=1)
    rhs = jnp.concatenate([dst, jnp.zeros((B, 3, 2), jnp.float32)], axis=1)
    wv = jnp.linalg.solve(L, rhs)                                  # (B, n+3, 2)

    # ---- lane-major sampling grid, padded to (rpad, nc), nc multiple of 128 ----
    G = s * s
    nc, tr, rpad = _tiling(G)
    gpad = rpad * nc

    lin = jnp.linspace(-1.0, 1.0, s, dtype=jnp.float32)
    iy, ix = jnp.meshgrid(lin, lin, indexing="ij")                 # matches torch.meshgrid 'ij'
    gxy = jnp.stack([ix, iy], axis=0).reshape(2, G)                # [0]=x, [1]=y over flat p = i*s + j
    if gpad != G:
        gxy = jnp.pad(gxy, ((0, 0), (0, gpad - G)))
    gxy = gxy.reshape(2, rpad, nc)

    src_flat = src.reshape(B * 2 * n)                              # (x0,y0,x1,y1,...)
    wv_flat = wv.reshape(B * 2 * (n + 3))                          # row-major (n+3, 2)

    row_tiles = rpad // tr
    # Leading grid axis is what megacore shards across v7x's 2 TCs — lead with
    # the larger of (row_tiles, B) so neither TC idles.
    if row_tiles >= B:
        grid = (row_tiles, B)
        batch_axis = 1
        gxy_map = lambda rt, b: (0, rt, 0)
        out_map = lambda rt, b: (b, 0, rt, 0)
    else:
        grid = (B, row_tiles)
        batch_axis = 0
        gxy_map = lambda b, rt: (0, rt, 0)
        out_map = lambda b, rt: (b, 0, rt, 0)

    cost = pl.CostEstimate(
        flops=(9 * n + 8) * B * G,
        transcendentals=n * B * G,
        bytes_accessed=8 * G + 8 * B * G,
    )

    out = pl.pallas_call(
        functools.partial(_tps_eval_kernel, n=n, batch_axis=batch_axis),
        out_shape=jax.ShapeDtypeStruct((B, 2, rpad, nc), jnp.float32),
        grid_spec=pltpu.PrefetchScalarGridSpec(
            num_scalar_prefetch=0,
            grid=grid,
            in_specs=[
                # shared lane-major grid coords (double-buffered VMEM block)
                pl.BlockSpec((2, tr, nc), gxy_map),
                # tiny scalar tables live in SMEM, read as scalars in the kernel
                pl.BlockSpec(memory_space=pltpu.MemorySpace.SMEM),  # src_flat
                pl.BlockSpec(memory_space=pltpu.MemorySpace.SMEM),  # wv_flat
            ],
            out_specs=pl.BlockSpec((1, 2, tr, nc), out_map),
        ),
        compiler_params=pltpu.CompilerParams(
            dimension_semantics=("parallel", "parallel")),
        cost_estimate=cost,
    )(gxy, src_flat, wv_flat)

    # Output is already channel-major; drop grid padding only if needed (it is a
    # no-op in the common exact-fit case) and reshape to NCHW.
    out = out.reshape(B, 2, gpad)
    if gpad != G:
        out = out[:, :, :G]
    return out.reshape(B, 2, s, s)


def _tps_warp_ref(src, dst, s):
    """Pure-JAX reference mirroring the PyTorch forward, for verification."""
    src = src.astype(jnp.float32)
    dst = dst.astype(jnp.float32)
    B, n, _ = src.shape
    delta = src[:, :, None, :] - src[:, None, :, :]
    K = jnp.sqrt(jnp.sum(delta * delta, axis=-1))
    P = jnp.concatenate([jnp.ones((B, n, 1), jnp.float32), src], axis=2)
    L = jnp.concatenate([K, P], axis=2)
    t = jnp.concatenate(
        [jnp.transpose(P, (0, 2, 1)), jnp.zeros((B, 3, 3), jnp.float32)], axis=2)
    L = jnp.concatenate([L, t], axis=1)
    rhs = jnp.concatenate([dst, jnp.zeros((B, 3, 2), jnp.float32)], axis=1)
    wv = jnp.linalg.solve(L, rhs)
    lin = jnp.linspace(-1.0, 1.0, s, dtype=jnp.float32)
    iy, ix = jnp.meshgrid(lin, lin, indexing="ij")
    gs = jnp.stack([ix, iy], axis=2).reshape(1, s * s, 2).astype(jnp.float32)
    delta = gs[:, :, None, :] - src[:, None, :, :]
    K = jnp.sqrt(jnp.sum(delta * delta, axis=-1))
    gs_b = jnp.broadcast_to(gs, (B, s * s, 2))
    P = jnp.concatenate([jnp.ones((B, s * s, 1), jnp.float32), gs_b], axis=2)
    L = jnp.concatenate([K, P], axis=2)
    out = jnp.matmul(L, wv)
    return out.reshape(B, s, s, 2).transpose(0, 3, 1, 2)


if __name__ == "__main__":
    key = jax.random.PRNGKey(0)
    B, n, s = 2, 8, 16
    k1, k2 = jax.random.split(key)
    # control points inside [-1, 1]^2 and a small deterministic perturbation for dst
    src = jax.random.uniform(k1, (B, n, 2), jnp.float32, minval=-0.9, maxval=0.9)
    dst = src + 0.1 * jax.random.normal(k2, (B, n, 2), jnp.float32)

    out = jax.block_until_ready(tps_warp(src, dst, s))
    ref = jax.block_until_ready(_tps_warp_ref(src, dst, s))

    assert out.shape == (B, 2, s, s)
    assert jnp.allclose(out, ref, rtol=1e-3, atol=1e-3), "mismatch vs reference"

    print("KERNEL_OK")
</pallas_src>

<mosaic_0001>
module attributes {stable_mosaic.version = 11 : i64} {
  func.func @_tps_eval_kernel(%arg0: i32, %arg1: i32, %arg2: memref<2x8x128xf32, #tpu.memory_space<vmem>>, %arg3: memref<32xf32, #tpu.memory_space<smem>>, %arg4: memref<44xf32, #tpu.memory_space<smem>>, %arg5: memref<1x2x8x128xf32, #tpu.memory_space<vmem>>) attributes {dimension_semantics = [#tpu.dimension_semantics<parallel>, #tpu.dimension_semantics<parallel>], iteration_bounds = array<i64: 2, 1>, scalar_prefetch = 0 : i64, scratch_operands = 0 : i64, tpu.core_type = #tpu.core_type<tc>, window_params = [{transform_indices = @transform_0, window_bounds = array<i64: 2, 8, 128>}, {transform_indices = @transform_1, window_bounds = array<i64: 32>}, {transform_indices = @transform_2, window_bounds = array<i64: 44>}, {transform_indices = @transform_3, window_bounds = array<i64: 1, 2, 8, 128>}]} {
    %c16_i32 = arith.constant 16 : i32
    %0 = arith.muli %arg0, %c16_i32 : i32
    %c22_i32 = arith.constant 22 : i32
    %1 = arith.muli %arg0, %c22_i32 : i32
    %c0 = arith.constant 0 : index
    %c0_0 = arith.constant 0 : index
    %c0_1 = arith.constant 0 : index
    %2 = vector.load %arg2[%c0, %c0_0, %c0_1] : memref<2x8x128xf32, #tpu.memory_space<vmem>>, vector<1x8x128xf32>
    %3 = vector.shape_cast %2 : vector<1x8x128xf32> to vector<8x128xf32>
    %c1 = arith.constant 1 : index
    %c0_2 = arith.constant 0 : index
    %c0_3 = arith.constant 0 : index
    %4 = vector.load %arg2[%c1, %c0_2, %c0_3] : memref<2x8x128xf32, #tpu.memory_space<vmem>>, vector<1x8x128xf32>
    %5 = vector.shape_cast %4 : vector<1x8x128xf32> to vector<8x128xf32>
    %c16_i32_4 = arith.constant 16 : i32
    %6 = arith.addi %1, %c16_i32_4 : i32
    %c0_i32 = arith.constant 0 : i32
    %7 = arith.addi %6, %c0_i32 : i32
    %8 = arith.index_cast %7 : i32 to index
    %9 = memref.load %arg4[%8] : memref<44xf32, #tpu.memory_space<smem>>
    %c18_i32 = arith.constant 18 : i32
    %10 = arith.addi %1, %c18_i32 : i32
    %c0_i32_5 = arith.constant 0 : i32
    %11 = arith.addi %10, %c0_i32_5 : i32
    %12 = arith.index_cast %11 : i32 to index
    %13 = memref.load %arg4[%12] : memref<44xf32, #tpu.memory_space<smem>>
    %14 = vector.broadcast %13 : f32 to vector<8x128xf32>
    %15 = arith.mulf %14, %3 : vector<8x128xf32>
    %16 = vector.broadcast %9 : f32 to vector<8x128xf32>
    %17 = arith.addf %16, %15 : vector<8x128xf32>
    %c20_i32 = arith.constant 20 : i32
    %18 = arith.addi %1, %c20_i32 : i32
    %c0_i32_6 = arith.constant 0 : i32
    %19 = arith.addi %18, %c0_i32_6 : i32
    %20 = arith.index_cast %19 : i32 to index
    %21 = memref.load %arg4[%20] : memref<44xf32, #tpu.memory_space<smem>>
    %22 = vector.broadcast %21 : f32 to vector<8x128xf32>
    %23 = arith.mulf %22, %5 : vector<8x128xf32>
    %24 = arith.addf %17, %23 : vector<8x128xf32>
    %c16_i32_7 = arith.constant 16 : i32
    %25 = arith.addi %1, %c16_i32_7 : i32
    %c1_i32 = arith.constant 1 : i32
    %26 = arith.addi %25, %c1_i32 : i32
    %27 = arith.index_cast %26 : i32 to index
    %28 = memref.load %arg4[%27] : memref<44xf32, #tpu.memory_space<smem>>
    %c18_i32_8 = arith.constant 18 : i32
    %29 = arith.addi %1, %c18_i32_8 : i32
    %c1_i32_9 = arith.constant 1 : i32
    %30 = arith.addi %29, %c1_i32_9 : i32
    %31 = arith.index_cast %30 : i32 to index
    %32 = memref.load %arg4[%31] : memref<44xf32, #tpu.memory_space<smem>>
    %33 = vector.broadcast %32 : f32 to vector<8x128xf32>
    %34 = arith.mulf %33, %3 : vector<8x128xf32>
    %35 = vector.broadcast %28 : f32 to vector<8x128xf32>
    %36 = arith.addf %35, %34 : vector<8x128xf32>
    %c20_i32_10 = arith.constant 20 : i32
    %37 = arith.addi %1, %c20_i32_10 : i32
    %c1_i32_11 = arith.constant 1 : i32
    %38 = arith.addi %37, %c1_i32_11 : i32
    %39 = arith.index_cast %38 : i32 to index
    %40 = memref.load %arg4[%39] : memref<44xf32, #tpu.memory_space<smem>>
    %41 = vector.broadcast %40 : f32 to vector<8x128xf32>
    %42 = arith.mulf %41, %5 : vector<8x128xf32>
    %43 = arith.addf %36, %42 : vector<8x128xf32>
    %c0_i32_12 = arith.constant 0 : i32
    %44 = arith.addi %0, %c0_i32_12 : i32
    %c0_i32_13 = arith.constant 0 : i32
    %45 = arith.addi %44, %c0_i32_13 : i32
    %46 = arith.index_cast %45 : i32 to index
    %47 = memref.load %arg3[%46] : memref<32xf32, #tpu.memory_space<smem>>
    %c0_i32_14 = arith.constant 0 : i32
    %48 = arith.addi %0, %c0_i32_14 : i32
    %c1_i32_15 = arith.constant 1 : i32
    %49 = arith.addi %48, %c1_i32_15 : i32
    %50 = arith.index_cast %49 : i32 to index
    %51 = memref.load %arg3[%50] : memref<32xf32, #tpu.memory_space<smem>>
    %52 = vector.broadcast %47 : f32 to vector<8x128xf32>
    %53 = arith.subf %3, %52 : vector<8x128xf32>
    %54 = vector.broadcast %51 : f32 to vector<8x128xf32>
    %55 = arith.subf %5, %54 : vector<8x128xf32>
    %56 = arith.mulf %53, %53 : vector<8x128xf32>
    %57 = arith.mulf %55, %55 : vector<8x128xf32>
    %58 = arith.addf %56, %57 : vector<8x128xf32>
    %59 = math.sqrt %58 : vector<8x128xf32>
    %c0_i32_16 = arith.constant 0 : i32
    %60 = arith.addi %1, %c0_i32_16 : i32
    %c0_i32_17 = arith.constant 0 : i32
    %61 = arith.addi %60, %c0_i32_17 : i32
    %62 = arith.index_cast %61 : i32 to index
    %63 = memref.load %arg4[%62] : memref<44xf32, #tpu.memory_space<smem>>
    %64 = vector.broadcast %63 : f32 to vector<8x128xf32>
    %65 = arith.mulf %64, %59 : vector<8x128xf32>
    %66 = arith.addf %24, %65 : vector<8x128xf32>
    %c0_i32_18 = arith.constant 0 : i32
    %67 = arith.addi %1, %c0_i32_18 : i32
    %c1_i32_19 = arith.constant 1 : i32
    %68 = arith.addi %67, %c1_i32_19 : i32
    %69 = arith.index_cast %68 : i32 to index
    %70 = memref.load %arg4[%69] : memref<44xf32, #tpu.memory_space<smem>>
    %71 = vector.broadcast %70 : f32 to vector<8x128xf32>
    %72 = arith.mulf %71, %59 : vector<8x128xf32>
    %73 = arith.addf %43, %72 : vector<8x128xf32>
    %c2_i32 = arith.constant 2 : i32
    %74 = arith.addi %0, %c2_i32 : i32
    %c0_i32_20 = arith.constant 0 : i32
    %75 = arith.addi %74, %c0_i32_20 : i32
    %76 = arith.index_cast %75 : i32 to index
    %77 = memref.load %arg3[%76] : memref<32xf32, #tpu.memory_space<smem>>
    %c2_i32_21 = arith.constant 2 : i32
    %78 = arith.addi %0, %c2_i32_21 : i32
    %c1_i32_22 = arith.constant 1 : i32
    %79 = arith.addi %78, %c1_i32_22 : i32
    %80 = arith.index_cast %79 : i32 to index
    %81 = memref.load %arg3[%80] : memref<32xf32, #tpu.memory_space<smem>>
    %82 = vector.broadcast %77 : f32 to vector<8x128xf32>
    %83 = arith.subf %3, %82 : vector<8x128xf32>
    %84 = vector.broadcast %81 : f32 to vector<8x128xf32>
    %85 = arith.subf %5, %84 : vector<8x128xf32>
    %86 = arith.mulf %83, %83 : vector<8x128xf32>
    %87 = arith.mulf %85, %85 : vector<8x128xf32>
    %88 = arith.addf %86, %87 : vector<8x128xf32>
    %89 = math.sqrt %88 : vector<8x128xf32>
    %c2_i32_23 = arith.constant 2 : i32
    %90 = arith.addi %1, %c2_i32_23 : i32
    %c0_i32_24 = arith.constant 0 : i32
    %91 = arith.addi %90, %c0_i32_24 : i32
    %92 = arith.index_cast %91 : i32 to index
    %93 = memref.load %arg4[%92] : memref<44xf32, #tpu.memory_space<smem>>
    %94 = vector.broadcast %93 : f32 to vector<8x128xf32>
    %95 = arith.mulf %94, %89 : vector<8x128xf32>
    %96 = arith.addf %66, %95 : vector<8x128xf32>
    %c2_i32_25 = arith.constant 2 : i32
    %97 = arith.addi %1, %c2_i32_25 : i32
    %c1_i32_26 = arith.constant 1 : i32
    %98 = arith.addi %97, %c1_i32_26 : i32
    %99 = arith.index_cast %98 : i32 to index
    %100 = memref.load %arg4[%99] : memref<44xf32, #tpu.memory_space<smem>>
    %101 = vector.broadcast %100 : f32 to vector<8x128xf32>
    %102 = arith.mulf %101, %89 : vector<8x128xf32>
    %103 = arith.addf %73, %102 : vector<8x128xf32>
    %c4_i32 = arith.constant 4 : i32
    %104 = arith.addi %0, %c4_i32 : i32
    %c0_i32_27 = arith.constant 0 : i32
    %105 = arith.addi %104, %c0_i32_27 : i32
    %106 = arith.index_cast %105 : i32 to index
    %107 = memref.load %arg3[%106] : memref<32xf32, #tpu.memory_space<smem>>
    %c4_i32_28 = arith.constant 4 : i32
    %108 = arith.addi %0, %c4_i32_28 : i32
    %c1_i32_29 = arith.constant 1 : i32
    %109 = arith.addi %108, %c1_i32_29 : i32
    %110 = arith.index_cast %109 : i32 to index
    %111 = memref.load %arg3[%110] : memref<32xf32, #tpu.memory_space<smem>>
    %112 = vector.broadcast %107 : f32 to vector<8x128xf32>
    %113 = arith.subf %3, %112 : vector<8x128xf32>
    %114 = vector.broadcast %111 : f32 to vector<8x128xf32>
    %115 = arith.subf %5, %114 : vector<8x128xf32>
    %116 = arith.mulf %113, %113 : vector<8x128xf32>
    %117 = arith.mulf %115, %115 : vector<8x128xf32>
    %118 = arith.addf %116, %117 : vector<8x128xf32>
    %119 = math.sqrt %118 : vector<8x128xf32>
    %c4_i32_30 = arith.constant 4 : i32
    %120 = arith.addi %1, %c4_i32_30 : i32
    %c0_i32_31 = arith.constant 0 : i32
    %121 = arith.addi %120, %c0_i32_31 : i32
    %122 = arith.index_cast %121 : i32 to index
    %123 = memref.load %arg4[%122] : memref<44xf32, #tpu.memory_space<smem>>
    %124 = vector.broadcast %123 : f32 to vector<8x128xf32>
    %125 = arith.mulf %124, %119 : vector<8x128xf32>
    %126 = arith.addf %96, %125 : vector<8x128xf32>
    %c4_i32_32 = arith.constant 4 : i32
    %127 = arith.addi %1, %c4_i32_32 : i32
    %c1_i32_33 = arith.constant 1 : i32
    %128 = arith.addi %127, %c1_i32_33 : i32
    %129 = arith.index_cast %128 : i32 to index
    %130 = memref.load %arg4[%129] : memref<44xf32, #tpu.memory_space<smem>>
    %131 = vector.broadcast %130 : f32 to vector<8x128xf32>
    %132 = arith.mulf %131, %119 : vector<8x128xf32>
    %133 = arith.addf %103, %132 : vector<8x128xf32>
    %c6_i32 = arith.constant 6 : i32
    %134 = arith.addi %0, %c6_i32 : i32
    %c0_i32_34 = arith.constant 0 : i32
    %135 = arith.addi %134, %c0_i32_34 : i32
    %136 = arith.index_cast %135 : i32 to index
    %137 = memref.load %arg3[%136] : memref<32xf32, #tpu.memory_space<smem>>
    %c6_i32_35 = arith.constant 6 : i32
    %138 = arith.addi %0, %c6_i32_35 : i32
    %c1_i32_36 = arith.constant 1 : i32
    %139 = arith.addi %138, %c1_i32_36 : i32
    %140 = arith.index_cast %139 : i32 to index
    %141 = memref.load %arg3[%140] : memref<32xf32, #tpu.memory_space<smem>>
    %142 = vector.broadcast %137 : f32 to vector<8x128xf32>
    %143 = arith.subf %3, %142 : vector<8x128xf32>
    %144 = vector.broadcast %141 : f32 to vector<8x128xf32>
    %145 = arith.subf %5, %144 : vector<8x128xf32>
    %146 = arith.mulf %143, %143 : vector<8x128xf32>
    %147 = arith.mulf %145, %145 : vector<8x128xf32>
    %148 = arith.addf %146, %147 : vector<8x128xf32>
    %149 = math.sqrt %148 : vector<8x128xf32>
    %c6_i32_37 = arith.constant 6 : i32
    %150 = arith.addi %1, %c6_i32_37 : i32
    %c0_i32_38 = arith.constant 0 : i32
    %151 = arith.addi %150, %c0_i32_38 : i32
    %152 = arith.index_cast %151 : i32 to index
    %153 = memref.load %arg4[%152] : memref<44xf32, #tpu.memory_space<smem>>
    %154 = vector.broadcast %153 : f32 to vector<8x128xf32>
    %155 = arith.mulf %154, %149 : vector<8x128xf32>
    %156 = arith.addf %126, %155 : vector<8x128xf32>
    %c6_i32_39 = arith.constant 6 : i32
    %157 = arith.addi %1, %c6_i32_39 : i32
    %c1_i32_40 = arith.constant 1 : i32
    %158 = arith.addi %157, %c1_i32_40 : i32
    %159 = arith.index_cast %158 : i32 to index
    %160 = memref.load %arg4[%159] : memref<44xf32, #tpu.memory_space<smem>>
    %161 = vector.broadcast %160 : f32 to vector<8x128xf32>
    %162 = arith.mulf %161, %149 : vector<8x128xf32>
    %163 = arith.addf %133, %162 : vector<8x128xf32>
    %c8_i32 = arith.constant 8 : i32
    %164 = arith.addi %0, %c8_i32 : i32
    %c0_i32_41 = arith.constant 0 : i32
    %165 = arith.addi %164, %c0_i32_41 : i32
    %166 = arith.index_cast %165 : i32 to index
    %167 = memref.load %arg3[%166] : memref<32xf32, #tpu.memory_space<smem>>
    %c8_i32_42 = arith.constant 8 : i32
    %168 = arith.addi %0, %c8_i32_42 : i32
    %c1_i32_43 = arith.constant 1 : i32
    %169 = arith.addi %168, %c1_i32_43 : i32
    %170 = arith.index_cast %169 : i32 to index
    %171 = memref.load %arg3[%170] : memref<32xf32, #tpu.memory_space<smem>>
    %172 = vector.broadcast %167 : f32 to vector<8x128xf32>
    %173 = arith.subf %3, %172 : vector<8x128xf32>
    %174 = vector.broadcast %171 : f32 to vector<8x128xf32>
    %175 = arith.subf %5, %174 : vector<8x128xf32>
    %176 = arith.mulf %173, %173 : vector<8x128xf32>
    %177 = arith.mulf %175, %175 : vector<8x128xf32>
    %178 = arith.addf %176, %177 : vector<8x128xf32>
    %179 = math.sqrt %178 : vector<8x128xf32>
    %c8_i32_44 = arith.constant 8 : i32
    %180 = arith.addi %1, %c8_i32_44 : i32
    %c0_i32_45 = arith.constant 0 : i32
    %181 = arith.addi %180, %c0_i32_45 : i32
    %182 = arith.index_cast %181 : i32 to index
    %183 = memref.load %arg4[%182] : memref<44xf32, #tpu.memory_space<smem>>
    %184 = vector.broadcast %183 : f32 to vector<8x128xf32>
    %185 = arith.mulf %184, %179 : vector<8x128xf32>
    %186 = arith.addf %156, %185 : vector<8x128xf32>
    %c8_i32_46 = arith.constant 8 : i32
    %187 = arith.addi %1, %c8_i32_46 : i32
    %c1_i32_47 = arith.constant 1 : i32
    %188 = arith.addi %187, %c1_i32_47 : i32
    %189 = arith.index_cast %188 : i32 to index
    %190 = memref.load %arg4[%189] : memref<44xf32, #tpu.memory_space<smem>>
    %191 = vector.broadcast %190 : f32 to vector<8x128xf32>
    %192 = arith.mulf %191, %179 : vector<8x128xf32>
    %193 = arith.addf %163, %192 : vector<8x128xf32>
    %c10_i32 = arith.constant 10 : i32
    %194 = arith.addi %0, %c10_i32 : i32
    %c0_i32_48 = arith.constant 0 : i32
    %195 = arith.addi %194, %c0_i32_48 : i32
    %196 = arith.index_cast %195 : i32 to index
    %197 = memref.load %arg3[%196] : memref<32xf32, #tpu.memory_space<smem>>
    %c10_i32_49 = arith.constant 10 : i32
    %198 = arith.addi %0, %c10_i32_49 : i32
    %c1_i32_50 = arith.constant 1 : i32
    %199 = arith.addi %198, %c1_i32_50 : i32
    %200 = arith.index_cast %199 : i32 to index
    %201 = memref.load %arg3[%200] : memref<32xf32, #tpu.memory_space<smem>>
    %202 = vector.broadcast %197 : f32 to vector<8x128xf32>
    %203 = arith.subf %3, %202 : vector<8x128xf32>
    %204 = vector.broadcast %201 : f32 to vector<8x128xf32>
    %205 = arith.subf %5, %204 : vector<8x128xf32>
    %206 = arith.mulf %203, %203 : vector<8x128xf32>
    %207 = arith.mulf %205, %205 : vector<8x128xf32>
    %208 = arith.addf %206, %207 : vector<8x128xf32>
    %209 = math.sqrt %208 : vector<8x128xf32>
    %c10_i32_51 = arith.constant 10 : i32
    %210 = arith.addi %1, %c10_i32_51 : i32
    %c0_i32_52 = arith.constant 0 : i32
    %211 = arith.addi %210, %c0_i32_52 : i32
    %212 = arith.index_cast %211 : i32 to index
    %213 = memref.load %arg4[%212] : memref<44xf32, #tpu.memory_space<smem>>
    %214 = vector.broadcast %213 : f32 to vector<8x128xf32>
    %215 = arith.mulf %214, %209 : vector<8x128xf32>
    %216 = arith.addf %186, %215 : vector<8x128xf32>
    %c10_i32_53 = arith.constant 10 : i32
    %217 = arith.addi %1, %c10_i32_53 : i32
    %c1_i32_54 = arith.constant 1 : i32
    %218 = arith.addi %217, %c1_i32_54 : i32
    %219 = arith.index_cast %218 : i32 to index
    %220 = memref.load %arg4[%219] : memref<44xf32, #tpu.memory_space<smem>>
    %221 = vector.broadcast %220 : f32 to vector<8x128xf32>
    %222 = arith.mulf %221, %209 : vector<8x128xf32>
    %223 = arith.addf %193, %222 : vector<8x128xf32>
    %c12_i32 = arith.constant 12 : i32
    %224 = arith.addi %0, %c12_i32 : i32
    %c0_i32_55 = arith.constant 0 : i32
    %225 = arith.addi %224, %c0_i32_55 : i32
    %226 = arith.index_cast %225 : i32 to index
    %227 = memref.load %arg3[%226] : memref<32xf32, #tpu.memory_space<smem>>
    %c12_i32_56 = arith.constant 12 : i32
    %228 = arith.addi %0, %c12_i32_56 : i32
    %c1_i32_57 = arith.constant 1 : i32
    %229 = arith.addi %228, %c1_i32_57 : i32
    %230 = arith.index_cast %229 : i32 to index
    %231 = memref.load %arg3[%230] : memref<32xf32, #tpu.memory_space<smem>>
    %232 = vector.broadcast %227 : f32 to vector<8x128xf32>
    %233 = arith.subf %3, %232 : vector<8x128xf32>
    %234 = vector.broadcast %231 : f32 to vector<8x128xf32>
    %235 = arith.subf %5, %234 : vector<8x128xf32>
    %236 = arith.mulf %233, %233 : vector<8x128xf32>
    %237 = arith.mulf %235, %235 : vector<8x128xf32>
    %238 = arith.addf %236, %237 : vector<8x128xf32>
    %239 = math.sqrt %238 : vector<8x128xf32>
    %c12_i32_58 = arith.constant 12 : i32
    %240 = arith.addi %1, %c12_i32_58 : i32
    %c0_i32_59 = arith.constant 0 : i32
    %241 = arith.addi %240, %c0_i32_59 : i32
    %242 = arith.index_cast %241 : i32 to index
    %243 = memref.load %arg4[%242] : memref<44xf32, #tpu.memory_space<smem>>
    %244 = vector.broadcast %243 : f32 to vector<8x128xf32>
    %245 = arith.mulf %244, %239 : vector<8x128xf32>
    %246 = arith.addf %216, %245 : vector<8x128xf32>
    %c12_i32_60 = arith.constant 12 : i32
    %247 = arith.addi %1, %c12_i32_60 : i32
    %c1_i32_61 = arith.constant 1 : i32
    %248 = arith.addi %247, %c1_i32_61 : i32
    %249 = arith.index_cast %248 : i32 to index
    %250 = memref.load %arg4[%249] : memref<44xf32, #tpu.memory_space<smem>>
    %251 = vector.broadcast %250 : f32 to vector<8x128xf32>
    %252 = arith.mulf %251, %239 : vector<8x128xf32>
    %253 = arith.addf %223, %252 : vector<8x128xf32>
    %c14_i32 = arith.constant 14 : i32
    %254 = arith.addi %0, %c14_i32 : i32
    %c0_i32_62 = arith.constant 0 : i32
    %255 = arith.addi %254, %c0_i32_62 : i32
    %256 = arith.index_cast %255 : i32 to index
    %257 = memref.load %arg3[%256] : memref<32xf32, #tpu.memory_space<smem>>
    %c14_i32_63 = arith.constant 14 : i32
    %258 = arith.addi %0, %c14_i32_63 : i32
    %c1_i32_64 = arith.constant 1 : i32
    %259 = arith.addi %258, %c1_i32_64 : i32
    %260 = arith.index_cast %259 : i32 to index
    %261 = memref.load %arg3[%260] : memref<32xf32, #tpu.memory_space<smem>>
    %262 = vector.broadcast %257 : f32 to vector<8x128xf32>
    %263 = arith.subf %3, %262 : vector<8x128xf32>
    %264 = vector.broadcast %261 : f32 to vector<8x128xf32>
    %265 = arith.subf %5, %264 : vector<8x128xf32>
    %266 = arith.mulf %263, %263 : vector<8x128xf32>
    %267 = arith.mulf %265, %265 : vector<8x128xf32>
    %268 = arith.addf %266, %267 : vector<8x128xf32>
    %269 = math.sqrt %268 : vector<8x128xf32>
    %c14_i32_65 = arith.constant 14 : i32
    %270 = arith.addi %1, %c14_i32_65 : i32
    %c0_i32_66 = arith.constant 0 : i32
    %271 = arith.addi %270, %c0_i32_66 : i32
    %272 = arith.index_cast %271 : i32 to index
    %273 = memref.load %arg4[%272] : memref<44xf32, #tpu.memory_space<smem>>
    %274 = vector.broadcast %273 : f32 to vector<8x128xf32>
    %275 = arith.mulf %274, %269 : vector<8x128xf32>
    %276 = arith.addf %246, %275 : vector<8x128xf32>
    %c14_i32_67 = arith.constant 14 : i32
    %277 = arith.addi %1, %c14_i32_67 : i32
    %c1_i32_68 = arith.constant 1 : i32
    %278 = arith.addi %277, %c1_i32_68 : i32
    %279 = arith.index_cast %278 : i32 to index
    %280 = memref.load %arg4[%279] : memref<44xf32, #tpu.memory_space<smem>>
    %281 = vector.broadcast %280 : f32 to vector<8x128xf32>
    %282 = arith.mulf %281, %269 : vector<8x128xf32>
    %283 = arith.addf %253, %282 : vector<8x128xf32>
    %c0_69 = arith.constant 0 : index
    %c0_70 = arith.constant 0 : index
    %c0_71 = arith.constant 0 : index
    %c0_72 = arith.constant 0 : index
    %284 = vector.load %arg5[%c0_69, %c0_70, %c0_71, %c0_72] : memref<1x2x8x128xf32, #tpu.memory_space<vmem>>, vector<1x1x8x128xf32>
    %285 = vector.shape_cast %284 : vector<1x1x8x128xf32> to vector<8x128xf32>
    %286 = vector.shape_cast %276 : vector<8x128xf32> to vector<1x1x8x128xf32>
    tpu.vector_store %arg5[%c0_69, %c0_70, %c0_71, %c0_72], %286 {strides = array<i32>} : memref<1x2x8x128xf32, #tpu.memory_space<vmem>>, vector<1x1x8x128xf32>,
    %c0_73 = arith.constant 0 : index
    %c1_74 = arith.constant 1 : index
    %c0_75 = arith.constant 0 : index
    %c0_76 = arith.constant 0 : index
    %287 = vector.load %arg5[%c0_73, %c1_74, %c0_75, %c0_76] : memref<1x2x8x128xf32, #tpu.memory_space<vmem>>, vector<1x1x8x128xf32>
    %288 = vector.shape_cast %287 : vector<1x1x8x128xf32> to vector<8x128xf32>
    %289 = vector.shape_cast %283 : vector<8x128xf32> to vector<1x1x8x128xf32>
    tpu.vector_store %arg5[%c0_73, %c1_74, %c0_75, %c0_76], %289 {strides = array<i32>} : memref<1x2x8x128xf32, #tpu.memory_space<vmem>>, vector<1x1x8x128xf32>,
    return
  }
  func.func @transform_0(%arg0: i32, %arg1: i32) -> (i32, i32, i32) {
    %c0_i32 = arith.constant 0 : i32
    %c0_i32_0 = arith.constant 0 : i32
    %c0_i32_1 = arith.constant 0 : i32
    return %c0_i32, %arg1, %c0_i32_0 : i32, i32, i32
  }
  func.func @transform_1(%arg0: i32, %arg1: i32) -> i32 {
    %c0_i32 = arith.constant 0 : i32
    %c0_i32_0 = arith.constant 0 : i32
    return %c0_i32 : i32
  }
  func.func @transform_2(%arg0: i32, %arg1: i32) -> i32 {
    %c0_i32 = arith.constant 0 : i32
    %c0_i32_0 = arith.constant 0 : i32
    return %c0_i32 : i32
  }
  func.func @transform_3(%arg0: i32, %arg1: i32) -> (i32, i32, i32, i32) {
    %c0_i32 = arith.constant 0 : i32
    %c0_i32_0 = arith.constant 0 : i32
    %c0_i32_1 = arith.constant 0 : i32
    return %arg0, %c0_i32, %arg1, %c0_i32_0 : i32, i32, i32, i32
  }
}

</mosaic_0001>

<bundles_post_ra>
// kernel: tpu_custom_call.1
= control target key start
LH: loop header
LB: loop body
LE: loop exit
PB: predicated region body
PF: predicated region fallthrough
CT: control target
= control target key end

     0   :  { %8 = vsyncpa [#allocation3], 0  ;;  %s1310_s0 = inlined_call_operand.hbm [shape: f32[2,8,128], index: 0, kind: input, shape index: {}]   ;;  %s1311_s1 = inlined_call_operand.hbm [shape: f32[32], index: 1, kind: input, shape index: {}]   ;;  %s1312_s2 = inlined_call_operand.vmem [shape: f32[44], index: 2, kind: input, shape index: {}]   ;;  %s1313_s3 = inlined_call_operand.hbm [shape: f32[2,2,8,128], index: 3, kind: output, shape index: {}]  }
   0x1   :  { %9 = vsyncpa [#allocation5], 0 }
   0x2   :  { %10 = vsyncpa [#allocation6], 0 }
   0x3   :  { %11 = vsyncpa [#allocation4], 0 }
   0x4   :  { %13 = vsyncpa [#allocation4 + $0x1], 0  ;;  %s929_s12 = smov 0   ;;  %s931_s13 = smov 0  }
   0x5   :  { %s933_s14 = smov 0   ;;  %s935_s15 = smov 0  }
   0x6   :  { %s937_s16 = smov 0   ;;  %s939_s17 = smov 0  }
   0x7 LB: > { %s625_s18 = sadd.s32 4294967295, %s900_s17   ;;  %s626_s19 = sadd.s32 4294967294, %s900_s17   ;;  %s900_s17 = sphi %s939_s17, %s19_s17   ;;  %s896_s16 = sphi %s937_s16, %s1322_s16   ;;  %s892_s15 = sphi %s935_s15, %s1321_s15   ;;  %s888_s14 = sphi %s933_s14, %s1320_s14   ;;  %s884_s13 = sphi %s931_s13, %s1319_s13   ;;  %s880_s12 = sphi %s929_s12, %s1318_s12  }
   0x8   : > { %s31_s20 = sadd.s32 1, %s896_s16  ;;  %s108_s21 = sadd.s32 1, %s888_s14 }
   0x9   : > { %p33_p0 = scmp.ge.s32.totalorder %s31_s20, 2  ;;  %p118_p1 = scmp.ne.s32.totalorder %s888_s14, %s884_s13 }
   0xa   : > { %p119_p2 = scmp.eq.s32.totalorder %s625_s18, 1  ;;  %p124_p3 = scmp.ne.s32.totalorder %s884_s13, %s880_s12 }
   0xb   : > { %s1324_s20 = smov (%p33_p0, %s31_s20), 0  ;;  %p125_p5 = scmp.eq.s32.totalorder %s626_s19, 1 }
   0xc   : > { %p969_p4 = por %p119_p2, %p118_p1  ;;  %s103_s23 = ssub.s32 %s896_s16, %s1324_s20 }
   0xd   : > { %p627_p6 = scmp.ge.s32.totalorder %s900_s17, 1  ;;  %p106_p7 = scmp.eq.s32.totalorder %s103_s23, 0 }
   0xe   : > { %p976_p8 = por %p125_p5, %p124_p3  ;;  %p132_p9 = scmp.lt.s32.totalorder %s900_s17, 3 }
   0xf   : > { %s982_s25 = scalar_select %p106_p7, %s888_s14, %s108_s21  }
  0x10   : > { %p984_p10 = pnand %p627_p6, %p132_p9  ;;  %p988_p11 = scmp.eq.s32.totalorder %s625_s18, 0 }
  0x11   : > { %s145_s30 = sshll.u32 %s1310_s0, 4  ;;  %s902_s4 = smov [#allocation2]   ;;  %s146_s30 = int_to_ptr.hbm [resolvable:$true] %s145_s30 }
  0x12   : > { %p658_p12 = pneg %p984_p10  ;;  %s147_s5 = sshll.u32 %s902_s4, 4  ;;  %s148_s5 = int_to_ptr.vmem [resolvable:$true] %s147_s5 }
  0x13   : > { %s160_s8 = sshll.u32 %s1311_s1, 4  ;;  %s903_s9 = smov 128   ;;  %s161_s8 = int_to_ptr.hbm [resolvable:$true] %s160_s8 }
  0x14   : > { %p659_p13 = pnand %p988_p11, %p658_p12  ;;  %s904_s10 = smov 8  }
  0x15   : > { %s170_s19 = sshll.u32 %s1312_s2, 4  ;;  %s905_s21 = smov [#allocation7]   ;;  %s171_s19 = int_to_ptr.vmem [resolvable:$true] %s170_s19 }
  0x16   : > { %661 = dma.hbm_to_vmem [thread:$0]  (!%p659_p13), %s146_s30, 256, %s148_s5, [#allocation3], %s903_s9, %s903_s9, %s904_s10  }
  0x17   : > { %664 = dma.hbm_to_smem (!%p659_p13), %s161_s8, 16, %s905_s21, [#allocation5]  }
  0x18   : > { %s906_s23 = smov [#allocation8]   ;;  %183 = sbr.rel (%p984_p10) target bundleno = 115 (0x73), region = 32 }
  0x19   : > { %667 = dma.vmem_to_smem (!%p659_p13), %s171_s19, 16, %s906_s23, [#allocation6]  }
  0x1d   : > { %863 = dma.done.wait (%p988_p11), [#allocation3], 256  }
  0x1e   : > { %865 = vsyncadd (%p988_p11), [#allocation3], 4294967040 }
  0x1f   : > { %867 = dma.done.wait (%p988_p11), [#allocation5], 16  }
  0x20   : > { %869 = vsyncadd (%p988_p11), [#allocation5], 4294967280 }
  0x21   : > { %871 = dma.done.wait (%p988_p11), [#allocation6], 16  }
  0x22   : > { %873 = vsyncadd (%p988_p11), [#allocation6], 4294967280 }
  0x23   : > { %200 = sfence }
  0x24   : > { %s1020_s26 = sshll.u32 %s892_s15, 4  ;;  %v1024_v0 = vld [vmem:[#allocation2] sm:$0xff]  ;;  %s1029_s5 = smul.u32 22, %s892_s15  ;;  %v1032_v3 = vld [vmem:[#allocation2 + $0x8] sm:$0xff] }
  0x25   : > { %s245_s28 = sld [smem:[#allocation7 + %s1020_s26]]  ;;  %s246_s29 = sadd.s32 1, %s1020_s26 }
  0x26   : > { %s247_s30 = sld [smem:[#allocation7 + %s246_s29]]  ;;  %s276_s4 = sadd.s32 2, %s1020_s26 }
  0x27   : > { %s278_s27 = sadd.s32 3, %s1020_s26  ;;  %s277_s6 = sld [smem:[#allocation7 + %s276_s4]] }
  0x28   : > { %s279_s7 = sld [smem:[#allocation7 + %s278_s27]]  ;;  %s309_s8 = sadd.s32 4, %s1020_s26 }
  0x29   : > { %s311_s9 = sadd.s32 5, %s1020_s26  ;;  %s219_s10 = sadd.s32 16, %s1029_s5 }
  0x2a   : > { %s221_s11 = sadd.s32 18, %s1029_s5  ;;  %s310_s15 = sld [smem:[#allocation7 + %s309_s8]] }
  0x2b   : > { %v248_v1 = vstv %s245_s28  ;;  %s312_s18 = sld [smem:[#allocation7 + %s311_s9]]  ;;  %s342_s19 = sadd.s32 6, %s1020_s26 }
  0x2c   : > { %v249_v2 = vsub.f32 %v1024_v0, %v248_v1  ;;  %v250_v4 = vstv %s247_s30  ;;  %s1040_s21 = sld [smem:[#allocation8 + %s219_s10]]  ;;  %s344_s23 = sadd.s32 7, %s1020_s26 }
  0x2d   : > { %v251_v5 = vsub.f32 %v1032_v3, %v250_v4  ;;  %v280_v8 = vstv %s277_s6  ;;  %s1043_s28 = sld [smem:[#allocation8 + %s221_s11]]  ;;  %s227_s29 = sadd.s32 20, %s1029_s5 }
  0x2e   : > { %v252_v6 = vmul.f32 %v249_v2, %v249_v2  ;;  %v281_v9 = vsub.f32 %v1024_v0, %v280_v8  ;;  %v282_v10 = vstv %s279_s7  ;;  %s234_s30 = sadd.s32 19, %s1029_s5  ;;  %s343_s4 = sld [smem:[#allocation7 + %s342_s19]] }
  0x2f   : > { %v253_v7 = vmul.f32 %v251_v5, %v251_v5  ;;  %v283_v12 = vsub.f32 %v1032_v3, %v282_v10  ;;  %s1051_s27 = sld [smem:[#allocation7 + %s344_s23]]  ;;  %s375_s6 = sadd.s32 8, %s1020_s26 }
  0x30   : > { %v284_v13 = vmul.f32 %v281_v9, %v281_v9  ;;  %s1054_s8 = sld [smem:[#allocation8 + %s227_s29]]  ;;  %s377_s9 = sadd.s32 9, %s1020_s26  ;;  %v313_v15 = vstv %s310_s15 }
  0x31   : > { %v1048_v11 = vadd.f32 %v253_v7, %v252_v6  ;;  %s1058_s10 = sld [smem:[#allocation8 + %s234_s30]]  ;;  %s240_s7 = sadd.s32 21, %s1029_s5  ;;  %v285_v14 = vmul.f32 %v283_v12, %v283_v12  ;;  %v315_v16 = vstv %s312_s18  ;;  %v314_v17 = vsub.f32 %v1024_v0, %v313_v15 }
  0x32   : > { %s232_s11 = sadd.s32 17, %s1029_s5  ;;  %v316_v18 = vsub.f32 %v1032_v3, %v315_v16  ;;  %s1064_s19 = sld [smem:[#allocation7 + %s375_s6]]  ;;  %v225_v30 = vstv %s1040_s21 }
  0x33   : > { %734 = vrsqrt.f32 %v1048_v11  ;;  %v1066_v19 = vadd.f32 %v285_v14, %v284_v13  ;;  %s1068_s23 = sld [smem:[#allocation7 + %s377_s9]]  ;;  %s408_s29 = sadd.s32 10, %s1020_s26  ;;  %v317_v20 = vmul.f32 %v314_v17, %v314_v17  ;;  %v223_v27 = vstv %s1043_s28 }
  0x34   : > { %s1071_s30 = sld [smem:[#allocation8 + %s240_s7]]  ;;  %v318_v21 = vmul.f32 %v316_v18, %v316_v18  ;;  %v346_v22 = vstv %s343_s4  ;;  %s410_s15 = sadd.s32 11, %s1020_s26  ;;  %v224_v36 = vmul.f32 %v223_v27, %v1024_v0  ;;  %vm262_vm0 = vcmp.eq.f32.partialorder %v1048_v11, inf }
  0x35   : > { %s1074_s18 = sld [smem:[#allocation8 + %s232_s11]]  ;;  %736 = vrsqrt.f32 %v1066_v19  ;;  %v347_v25 = vsub.f32 %v1024_v0, %v346_v22  ;;  %v348_v26 = vstv %s1051_s27  ;;  %s271_s9 = sadd.s32 1, %s1029_s5  ;;  %v265_v7 = vand.u32 2147483648, %v1048_v11 }
  0x36   : > { %v1077_v24 = vadd.f32 %v318_v21, %v317_v20  ;;  %s1081_s6 = sld [smem:[#allocation7 + %s408_s29]]  ;;  %v349_v29 = vsub.f32 %v1032_v3, %v348_v26  ;;  %v229_v31 = vstv %s1054_s8  ;;  %s441_s28 = sadd.s32 12, %s1020_s26  ;;  %v226_v53 = vadd.f32 %v225_v30, %v224_v36 }
  0x37   : > { %s1086_s4 = sld [smem:[#allocation7 + %s410_s15]]  ;;  %v350_v33 = vmul.f32 %v347_v25, %v347_v25  ;;  %v236_v37 = vstv %s1058_s10  ;;  %s299_s7 = sadd.s32 2, %s1029_s5  ;;  %v230_v41 = vmul.f32 %v229_v31, %v1032_v3  ;;  %vm264_vm1 = vcmp.eq.f32.partialorder %v1048_v11, 0.0 }
  0x38   : > { %738 = vrsqrt.f32 %v1077_v24  ;;  %v351_v34 = vmul.f32 %v349_v29, %v349_v29  ;;  %v379_v35 = vstv %s1064_s19  ;;  %s1097_s27 = sld [smem:[#allocation8 + %s1029_s5]]  ;;  %s304_s8 = sadd.s32 3, %s1029_s5  ;;  %v237_v49 = vmul.f32 %v236_v37, %v1024_v0 }
  0x39   : > { %v735_v23 = vpop.eup %734  ;;  %v380_v38 = vsub.f32 %v1024_v0, %v379_v35  ;;  %v381_v39 = vstv %s1068_s23  ;;  %s1103_s21 = sld [smem:[#allocation8 + %s271_s9]]  ;;  %s443_s11 = sadd.s32 13, %s1020_s26  ;;  %v231_v6 = vadd.f32 %v230_v41, %v226_v53  ;;  %vm294_vm2 = vcmp.eq.f32.partialorder %v1066_v19, inf }
  0x3a   : > { %v256_v28 = vmul.f32 %v735_v23, %v1048_v11  ;;  %v1106_v43 = vadd.f32 %v351_v34, %v350_v33  ;;  %v382_v44 = vsub.f32 %v1032_v3, %v381_v39  ;;  %v242_v45 = vstv %s1071_s30  ;;  %s1112_s10 = sld [smem:[#allocation7 + %s441_s28]]  ;;  %s332_s23 = sadd.s32 4, %s1029_s5 }
  0x3b   : > { %v737_v40 = vpop.eup %736  ;;  %v383_v47 = vmul.f32 %v380_v38, %v380_v38  ;;  %v238_v50 = vstv %s1074_s18  ;;  %s1117_s19 = sld [smem:[#allocation8 + %s299_s7]]  ;;  %s337_s30 = sadd.s32 5, %s1029_s5  ;;  %v243_v57 = vmul.f32 %v242_v45, %v1032_v3  ;;  %vm296_vm3 = vcmp.eq.f32.partialorder %v1066_v19, 0.0 }
  0x3c   : > { %v257_v32 = vmul.f32 %v735_v23, %v256_v28  ;;  %v288_v46 = vmul.f32 %v737_v40, %v1066_v19  ;;  %v412_v48 = vstv %s1081_s6  ;;  %740 = vrsqrt.f32 %v1106_v43  ;;  %s1121_s29 = sld [smem:[#allocation8 + %s304_s8]]  ;;  %s476_s9 = sadd.s32 15, %s1020_s26 }
  0x3d   : > { %v384_v55 = vmul.f32 %v382_v44, %v382_v44  ;;  %v413_v56 = vsub.f32 %v1024_v0, %v412_v48  ;;  %v414_v60 = vstv %s1086_s4  ;;  %s1128_s15 = sld [smem:[#allocation7 + %s443_s11]]  ;;  %v239_v1 = vadd.f32 %v238_v50, %v237_v49  ;;  %s474_s4 = sadd.s32 14, %s1020_s26 }
  0x3e   : > { %v258_v42 = vmul.f32 0.5, %v257_v32  ;;  %v739_v52 = vpop.eup %738  ;;  %v289_v54 = vmul.f32 %v737_v40, %v288_v46  ;;  %s1131_s18 = sld [smem:[#allocation8 + %s332_s23]]  ;;  %v415_v63 = vsub.f32 %v1032_v3, %v414_v60  ;;  %v268_v14 = vstv %s1097_s27  ;;  %s365_s7 = sadd.s32 6, %s1029_s5 }
  0x3f   : > { %v321_v59 = vmul.f32 %v739_v52, %v1077_v24  ;;  %v1133_v62 = vadd.f32 %v384_v55, %v383_v47  ;;  %s1137_s6 = sld [smem:[#allocation8 + %s337_s30]]  ;;  %v416_v5 = vmul.f32 %v413_v56, %v413_v56  ;;  %v244_v18 = vadd.f32 %v243_v57, %v239_v1  ;;  %s398_s11 = sadd.s32 8, %s1029_s5 }
  0x40   : > { %v259_v51 = vsub.f32 1.5, %v258_v42  ;;  %v290_v61 = vmul.f32 0.5, %v289_v54  ;;  %v417_v13 = vmul.f32 %v415_v63, %v415_v63  ;;  %v445_v17 = vstv %s1112_s10  ;;  %s1153_s28 = sld [smem:[#allocation7 + %s474_s4]]  ;;  %s464_s4 = sadd.s32 12, %s1029_s5 }
  0x41   : > { %v322_v4 = vmul.f32 %v739_v52, %v321_v59  ;;  %742 = vrsqrt.f32 %v1133_v62  ;;  %v273_v20 = vstv %s1103_s21  ;;  %s1157_s27 = sld [smem:[#allocation7 + %s476_s9]]  ;;  %v446_v27 = vsub.f32 %v1024_v0, %v445_v17  ;;  %s370_s21 = sadd.s32 7, %s1029_s5 }
  0x42   : > { %v260_v58 = vmul.f32 %v735_v23, %v259_v51  ;;  %v291_v8 = vsub.f32 1.5, %v290_v61  ;;  %v741_v9 = vpop.eup %740  ;;  %v1151_v22 = vadd.f32 %v417_v13, %v416_v5  ;;  %v301_v30 = vstv %s1117_s19  ;;  %s1180_s8 = sld [smem:[#allocation8 + %s365_s7]]  ;;  %s403_s19 = sadd.s32 9, %s1029_s5 }
  0x43   : > { %v323_v12 = vmul.f32 0.5, %v322_v4  ;;  %v354_v16 = vmul.f32 %v741_v9, %v1106_v43  ;;  %v447_v28 = vstv %s1128_s15  ;;  %v306_v31 = vstv %s1121_s29  ;;  %s1184_s10 = sld [smem:[#allocation8 + %s370_s21]]  ;;  %s431_s29 = sadd.s32 10, %s1029_s5 }
  0x44   : > { %v261_v2 = vmul.f32 %v260_v58, %v1048_v11  ;;  %v292_v15 = vmul.f32 %v737_v40, %v291_v8  ;;  %744 = vrsqrt.f32 %v1151_v22  ;;  %v334_v32 = vstv %s1131_s18  ;;  %s1204_s23 = sld [smem:[#allocation8 + %s398_s11]]  ;;  %s436_s15 = sadd.s32 11, %s1029_s5 }
  0x45   : > { %v324_v21 = vsub.f32 1.5, %v323_v12  ;;  %v355_v25 = vmul.f32 %v741_v9, %v354_v16  ;;  %v297_v34 = vand.u32 2147483648, %v1066_v19  ;;  %v339_v35 = vstv %s1137_s6  ;;  %s1211_s30 = sld [smem:[#allocation8 + %s403_s19]]  ;;  %s469_s9 = sadd.s32 13, %s1029_s5 }
  0x46   : > { %v263_v10 = vsel %vm262_vm0, %v1048_v11, %v261_v2  ;;  %v293_v23 = vmul.f32 %v292_v15, %v1066_v19  ;;  %v448_v40 = vsub.f32 %v1032_v3, %v447_v28  ;;  %vm327_vm4 = vcmp.eq.f32.partialorder %v1077_v24, inf  ;;  %s1216_s18 = sld [smem:[#allocation8 + %s431_s29]]  ;;  %s497_s7 = sadd.s32 14, %s1029_s5 }
  0x47   : > { %v266_v11 = vsel %vm264_vm1, %v265_v7, %v263_v10  ;;  %v325_v26 = vmul.f32 %v739_v52, %v324_v21  ;;  %v743_v29 = vpop.eup %742  ;;  %v356_v33 = vmul.f32 0.5, %v355_v25  ;;  %v449_v44 = vmul.f32 %v446_v27, %v446_v27  ;;  %s1226_s6 = sld [smem:[#allocation8 + %s436_s15]]  ;;  %s502_s21 = sadd.s32 15, %s1029_s5 }
  0x48   : > { %v387_v36 = vmul.f32 %v743_v29, %v1133_v62  ;;  %v269_v37 = vmul.f32 %v268_v14, %v266_v11  ;;  %v295_v38 = vsel %vm294_vm2, %v1066_v19, %v293_v23  ;;  %vm329_vm5 = vcmp.eq.f32.partialorder %v1077_v24, 0.0  ;;  %s211_s11 = sand.u32 1, %s884_s13   ;;  %s523_s29 = scalar_lea.hbm %s1313_s3, %s1020_s26 }
  0x49   : > { %v357_v39 = vsub.f32 1.5, %v356_v33  ;;  %v326_v41 = vmul.f32 %v325_v26, %v1077_v24  ;;  %v330_v45 = vand.u32 2147483648, %v1077_v24  ;;  %vm360_vm6 = vcmp.eq.f32.partialorder %v1106_v43, inf  ;;  %s635_s5 = sshll.u32 %s211_s11, 4  ;;  %s511_s26 = scalar_lea.sflag [#allocation4], %s211_s11 }
  0x4a   : > { %v388_v42 = vmul.f32 %v743_v29, %v387_v36  ;;  %v745_v47 = vpop.eup %744  ;;  %v274_v48 = vmul.f32 %v273_v20, %v266_v11  ;;  %v298_v49 = vsel %vm296_vm3, %v297_v34, %v295_v38  ;;  %v450_v51 = vmul.f32 %v448_v40, %v448_v40 }
  0x4b   : > { %v358_v46 = vmul.f32 %v741_v9, %v357_v39  ;;  %v270_v52 = vadd.f32 %v269_v37, %v231_v6  ;;  %v420_v53 = vmul.f32 %v745_v47, %v1151_v22  ;;  %v478_v54 = vstv %s1153_s28  ;;  %s1236_s28 = sld [smem:[#allocation8 + %s464_s4]] }
  0x4c   : > { %v389_v50 = vmul.f32 0.5, %v388_v42  ;;  %v480_v55 = vstv %s1157_s27  ;;  %v328_v56 = vsel %vm327_vm4, %v1077_v24, %v326_v41  ;;  %v1194_v19 = vadd.f32 %v450_v51, %v449_v44  ;;  %s1241_s27 = sld [smem:[#allocation8 + %s469_s9]] }
  0x4d   : > { %v359_v57 = vmul.f32 %v358_v46, %v1106_v43  ;;  %v302_v59 = vmul.f32 %v301_v30, %v298_v49  ;;  %v421_v60 = vmul.f32 %v745_v47, %v420_v53  ;;  %v479_v61 = vsub.f32 %v1024_v0, %v478_v54 }
  0x4e   : > { %v390_v58 = vsub.f32 1.5, %v389_v50  ;;  %v481_v63 = vsub.f32 %v1032_v3, %v480_v55  ;;  %v275_v1 = vadd.f32 %v274_v48, %v244_v18  ;;  %v307_v2 = vmul.f32 %v306_v31, %v298_v49 }
  0x4f   : > { %746 = vrsqrt.f32 %v1194_v19  ;;  %v331_v5 = vsel %vm329_vm5, %v330_v45, %v328_v56  ;;  %vm362_vm7 = vcmp.eq.f32.partialorder %v1106_v43, 0.0  ;;  %v363_v6 = vand.u32 2147483648, %v1106_v43 }
  0x50   : > { %v391_v4 = vmul.f32 %v743_v29, %v390_v58  ;;  %v422_v7 = vmul.f32 0.5, %v421_v60  ;;  %v361_v0 = vsel %vm360_vm6, %v1106_v43, %v359_v57  ;;  %v482_v24 = vmul.f32 %v479_v61, %v479_v61 }
  0x51   : > { %v483_v8 = vmul.f32 %v481_v63, %v481_v63  ;;  %v303_v9 = vadd.f32 %v302_v59, %v270_v52  ;;  %v367_v10 = vstv %s1180_s8  ;;  %vm393_vm8 = vcmp.eq.f32.partialorder %v1133_v62, inf  ;;  %s1249_s8 = sld [smem:[#allocation8 + %s497_s7]] }
  0x52   : > { %v392_v3 = vmul.f32 %v391_v4, %v1133_v62  ;;  %v423_v12 = vsub.f32 1.5, %v422_v7  ;;  %v308_v13 = vadd.f32 %v307_v2, %v275_v1  ;;  %v335_v14 = vmul.f32 %v334_v32, %v331_v5 }
  0x53   : > { %v340_v15 = vmul.f32 %v339_v35, %v331_v5  ;;  %v1218_v16 = vadd.f32 %v483_v8, %v482_v24  ;;  %v364_v17 = vsel %vm362_vm7, %v363_v6, %v361_v0  ;;  %v372_v18 = vstv %s1184_s10  ;;  %s1253_s10 = sld [smem:[#allocation8 + %s502_s21]] }
  0x54   : > { %v396_v20 = vand.u32 2147483648, %v1133_v62  ;;  %v424_v21 = vmul.f32 %v745_v47, %v423_v12  ;;  %v394_v23 = vsel %vm393_vm8, %v1133_v62, %v392_v3  ;;  %vm395_vm9 = vcmp.eq.f32.partialorder %v1133_v62, 0.0 }
  0x55   : > { %v747_v11 = vpop.eup %746  ;;  %748 = vrsqrt.f32 %v1218_v16  ;;  %vm426_vm10 = vcmp.eq.f32.partialorder %v1151_v22, inf  ;;  %v336_v26 = vadd.f32 %v335_v14, %v303_v9  ;;  %v341_v27 = vadd.f32 %v340_v15, %v308_v13 }
  0x56   : > { %v425_v25 = vmul.f32 %v424_v21, %v1151_v22  ;;  %v453_v43 = vmul.f32 %v747_v11, %v1194_v19  ;;  %v368_v28 = vmul.f32 %v367_v10, %v364_v17  ;;  %v373_v29 = vmul.f32 %v372_v18, %v364_v17 }
  0x57   : > { %v397_v62 = vsel %vm395_vm9, %v396_v20, %v394_v23  ;;  %v400_v30 = vstv %s1204_s23  ;;  %v429_v31 = vand.u32 2147483648, %v1151_v22  ;;  %v405_v33 = vstv %s1211_s30  ;;  %s213_s30 = scalar_lea.vmem [#allocation9], %s635_s5 }
  0x58   : > { %v454_v32 = vmul.f32 %v747_v11, %v453_v43  ;;  %v427_v34 = vsel %vm426_vm10, %v1151_v22, %v425_v25  ;;  %vm428_vm11 = vcmp.eq.f32.partialorder %v1151_v22, 0.0  ;;  %v369_v37 = vadd.f32 %v368_v28, %v336_v26  ;;  %s524_s15 = sshll.u32 %s213_s30, 4  ;;  %s525_s15 = int_to_ptr.vmem [resolvable:$true] %s524_s15 }
  0x59   : > { %v374_v38 = vadd.f32 %v373_v29, %v341_v27  ;;  %v401_v39 = vmul.f32 %v400_v30, %v397_v62  ;;  %v433_v40 = vstv %s1216_s18  ;;  %v406_v41 = vmul.f32 %v405_v33, %v397_v62  ;;  %s1273_s18 = sshll.u32 %s523_s29, 4  ;;  %s527_s18 = int_to_ptr.hbm [resolvable:$true] %s1273_s18 }
  0x5a   : > { %v455_v35 = vmul.f32 0.5, %v454_v32  ;;  %v430_v42 = vsel %vm428_vm11, %v429_v31, %v427_v34  ;;  %v438_v46 = vstv %s1226_s6  ;;  %vm459_vm12 = vcmp.eq.f32.partialorder %v1194_v19, inf  ;;  %s824_s6 = sshra.s32 %s527_s18, 4  ;;  %s825_s6 = int_to_ptr.hbm [resolvable:$true] %s824_s6 }
  0x5b   : > { %v749_v36 = vpop.eup %748  ;;  %v402_v48 = vadd.f32 %v401_v39, %v369_v37  ;;  %v434_v49 = vmul.f32 %v433_v40, %v430_v42  ;;  %vm461_vm13 = vcmp.eq.f32.partialorder %v1194_v19, 0.0  ;;  %v462_v50 = vand.u32 2147483648, %v1194_v19  ;;  %s826_s4 = scalar_lea.hbm %s825_s6, 16  ;;  %p831_p3 = scmp.lt.s32.totalorder %s825_s6, %s1313_s3 }
  0x5c   : > { %v456_v44 = vsub.f32 1.5, %v455_v35  ;;  %v486_v45 = vmul.f32 %v749_v36, %v1218_v16  ;;  %v407_v51 = vadd.f32 %v406_v41, %v374_v38  ;;  %v439_v52 = vmul.f32 %v438_v46, %v430_v42  ;;  %p827_p0 = scmp.ne.s32.totalorder %s825_s6, %s826_s4 }
  0x5d   : > { %v466_v55 = vstv %s1236_s28  ;;  %v471_v56 = vstv %s1241_s27  ;;  %v435_v59 = vadd.f32 %v434_v49, %v402_v48  ;;  %vm492_vm14 = vcmp.eq.f32.partialorder %v1218_v16, inf  ;;  %s830_s27 = scalar_lea.hbm %s1313_s3, 32 }
  0x5e   : > { %v457_v22 = vmul.f32 %v747_v11, %v456_v44  ;;  %v487_v47 = vmul.f32 %v749_v36, %v486_v45  ;;  %v440_v61 = vadd.f32 %v439_v52, %v407_v51  ;;  %v495_v4 = vand.u32 2147483648, %v1218_v16  ;;  %p828_p1 = pnand %p827_p0, %p969_p4  ;;  %p832_p5 = scmp.lt.s32.totalorder %s830_s27, %s826_s4 }
  0x5f   : > { %vm494_vm15 = vcmp.eq.f32.partialorder %v1218_v16, 0.0  ;;  %v504_v6 = vstv %s1253_s10 }
  0x60   : > { %v458_v53 = vmul.f32 %v457_v22, %v1194_v19  ;;  %v488_v54 = vmul.f32 0.5, %v487_v47  ;;  %p829_p2 = pneg %p828_p1  ;;  %p833_p6 = por %p832_p5, %p831_p3 }
  0x62   : > { %v460_v57 = vsel %vm459_vm12, %v1194_v19, %v458_v53  ;;  %v489_v58 = vsub.f32 1.5, %v488_v54  ;;  %v499_v19 = vstv %s1249_s8  ;;  %p834_p7 = pnand %p833_p6, %p829_p2 }
  0x63   : > { %v463_v60 = vsel %vm461_vm13, %v462_v50, %v460_v57 }
  0x64   : > { %v467_v63 = vmul.f32 %v466_v55, %v463_v60  ;;  %v472_v1 = vmul.f32 %v471_v56, %v463_v60  ;;  %v490_v2 = vmul.f32 %v749_v36, %v489_v58 }
  0x66   : > { %v491_v5 = vmul.f32 %v490_v2, %v1218_v16  ;;  %v468_v7 = vadd.f32 %v467_v63, %v435_v59  ;;  %v473_v0 = vadd.f32 %v472_v1, %v440_v61 }
  0x68   : > { %v493_v3 = vsel %vm492_vm14, %v1218_v16, %v491_v5 }
  0x69   : > { %v496_v24 = vsel %vm494_vm15, %v495_v4, %v493_v3 }
  0x6a   : > { %v500_v8 = vmul.f32 %v499_v19, %v496_v24  ;;  %v505_v9 = vmul.f32 %v504_v6, %v496_v24 }
  0x6c   : > { %v501_v10 = vadd.f32 %v500_v8, %v468_v7  ;;  %v506_v12 = vadd.f32 %v505_v9, %v473_v0 }
  0x6e   : > { %507 = vst [vmem:[%s213_s30] sm:$0xff] %v501_v10 }
  0x6f   : > { %637 = vst [vmem:[%s213_s30 + $0x8] sm:$0xff] %v506_v12 }
  0x70   : > { %837 = shalt.err (!%p834_p7)
}
  0x71   : > { %s907_s8 = smov 128   ;;  %s908_s10 = smov 8  }
  0x72   : > { %656 = dma.vmem_to_hbm [thread:$0]  (%p969_p4), %s525_s15, 256, %s527_s18, %s511_s26, %s907_s8, %s907_s8, %s908_s10  }
  0x73 PF: > { %p678_p9 = scmp.ge.s32.totalorder %s900_s17, 2  ;;  %s541_s11 = sand.u32 1, %s880_s12  }
  0x74   : > { %s542_s5 = scalar_lea.sflag [#allocation4], %s541_s11 }
  0x75   : > { %p669_p10 = pnand %p678_p9, %p976_p8 }
  0x77   : > { %p670_p11 = pneg %p669_p10 }
  0x79   : > { %875 = dma.done.wait (%p670_p11), %s542_s5, 256  }
  0x7a   : > { %877 = vsyncadd (%p670_p11), %s542_s5, 4294967040  ;;  %s19_s17 = sadd.s32 1, %s900_s17   ;;  %s1318_s12 = smov %s884_s13 }
  0x7b   : > { %p16_p12 = scmp.ge.s32.totalorder %s19_s17, 4   ;;  %s1319_s13 = smov %s888_s14 }
  0x7c   : > { %s1320_s14 = smov %s982_s25  ;;  %s1321_s15 = smov %s896_s16 }
  0x7d   : > { %s1322_s16 = smov %s1324_s20  ;;  %18 = sbr.rel (!%p16_p12) target bundleno = 7 (0x7), region = 82 }
  0x82   :  { %548 = vsyncpa [#allocation3], 1 }
  0x83   :  { %550 = vsyncpa [#allocation3 + $0x1], 1 }
  0x84   :  { %551 = vsyncpa [#allocation4], 1 }
  0x85   :  { %553 = vsyncpa [#allocation4 + $0x1], 1 }
  0x86   :  { %554 = vsyncpa [#allocation5], 1 }
  0x87   :  { %556 = vsyncpa [#allocation5 + $0x1], 1 }
  0x88   :  { %557 = vsyncpa [#allocation6], 1 }
  0x89   :  { %559 = vsyncpa [#allocation6 + $0x1], 1 }

</bundles_post_ra>
